<compile_context>
chip_gen: v6e
topology: v6e:2x2x1
jax: 0.10.0
libtpu: 0.0.40
codegen_flags: <defaults>
</compile_context>

<pallas_src>
import functools

import jax
import jax.numpy as jnp
from jax.experimental import pallas as pl
from jax.experimental.pallas import tpu as pltpu


# --------------------------------------------------------------------------
# Kernel
# --------------------------------------------------------------------------
def _channel_attention_kernel(x_ref, w1_ref, w2_ref, o_ref, *, hw_true):
    """Block shapes: x (N_b, C, HWp), w1 (C_r, C), w2 (C, C_r), o (N_b, C, HWp)."""
    x = x_ref[...].astype(jnp.float32)                      # (N_b, C, HWp)
    n_b, _, hw_pad = x.shape

    # Pooled statistics over the (possibly padded) spatial axis.
    if hw_pad != hw_true:
        col = jax.lax.broadcasted_iota(jnp.int32, x.shape, dimension=2)
        valid = col < hw_true
        x_sum = jnp.where(valid, x, 0.0)
        x_max = jnp.where(valid, x, -jnp.inf)
    else:
        x_sum = x
        x_max = x

    avg_pool = jnp.sum(x_sum, axis=2) * (1.0 / hw_true)     # (N_b, C)
    max_pool = jnp.max(x_max, axis=2)                       # (N_b, C)

    # Shared MLP, fused over {avg, max} and batch into one matmul pair.
    pooled = jnp.concatenate([avg_pool, max_pool], axis=0)  # (2*N_b, C)
    w1 = w1_ref[...].astype(jnp.float32)                    # (C_r, C)
    w2 = w2_ref[...].astype(jnp.float32)                    # (C,  C_r)
    h = jnp.dot(pooled, w1.T, preferred_element_type=jnp.float32)   # (2*N_b, C_r)
    h = jnp.maximum(h, 0.0)                                          # ReLU
    att = jnp.dot(h, w2.T, preferred_element_type=jnp.float32)       # (2*N_b, C)
    att_sum = att[:n_b] + att[n_b:]                                  # (N_b, C)

    scale = jax.nn.sigmoid(att_sum)[:, :, None]              # (N_b, C, 1)
    o_ref[...] = (x * scale).astype(o_ref.dtype)


# --------------------------------------------------------------------------
# Wrapper
# --------------------------------------------------------------------------
def _pick_batch_block(n, per_image_bytes, max_block_bytes, target_bytes=4 << 20):
    """Largest divisor of n whose block fits the budget; stop growing at target."""
    best = 1
    for nb in range(1, n + 1):
        if n % nb:
            continue
        if nb * per_image_bytes > max_block_bytes:
            break
        best = nb
        if nb * per_image_bytes >= target_bytes:
            break
    # v7x has two TensorCores: prefer >=2 parallel grid steps if blocks stay >= ~1 MiB.
    if n // best == 1 and best > 1:
        for nb in range(best - 1, 0, -1):
            if n % nb == 0 and n // nb >= 2 and nb * per_image_bytes >= (1 << 20):
                best = nb
                break
    return best


def channel_attention(x, w1, w2):
    """CBAM ChannelAttention forward. x: (N, C, H, W); w1: (C_r, C); w2: (C, C_r)."""
    N, C, H, W = x.shape
    HW = H * W
    itemsize = jnp.dtype(x.dtype).itemsize

    # Lane-dense spatial axis: pad H*W up to a multiple of 128; pads masked in-kernel.
    HW_pad = ((HW + 127) // 128) * 128
    x_flat = x.reshape(N, C, HW)
    if HW_pad != HW:
        x_flat = jnp.pad(x_flat, ((0, 0), (0, 0), (0, HW_pad - HW)))

    # Batch-tile so each grid step moves a few MiB, capped for v7x's 64 MiB VMEM
    # (double-buffered input + output ~= 4x block bytes).
    per_image_bytes = C * HW_pad * itemsize
    max_block_bytes = 8 << 20
    n_b = _pick_batch_block(N, per_image_bytes, max_block_bytes)
    block_bytes = n_b * per_image_bytes
    # TODO(synk): for feature maps where a single image exceeds the block budget,
    # switch to a two-pass HW-tiled reduce-then-scale structure instead of one
    # resident (C, HW) block per image.
    vmem_limit = int(min(48 << 20, max(32 << 20, 4 * block_bytes + (4 << 20))))

    kernel = functools.partial(_channel_attention_kernel, hw_true=HW)

    out_flat = pl.pallas_call(
        kernel,
        out_shape=jax.ShapeDtypeStruct((N, C, HW_pad), x.dtype),
        grid_spec=pltpu.PrefetchScalarGridSpec(
            num_scalar_prefetch=0,
            grid=(N // n_b,),
            in_specs=[
                pl.BlockSpec((n_b, C, HW_pad), lambda n: (n, 0, 0)),
                pl.BlockSpec(w1.shape, lambda n: (0, 0)),
                pl.BlockSpec(w2.shape, lambda n: (0, 0)),
            ],
            out_specs=pl.BlockSpec((n_b, C, HW_pad), lambda n: (n, 0, 0)),
        ),
        compiler_params=pltpu.CompilerParams(
            dimension_semantics=("parallel",),
            vmem_limit_bytes=vmem_limit,
        ),
    )(x_flat, w1, w2)

    if HW_pad != HW:
        out_flat = out_flat[:, :, :HW]
    return out_flat.reshape(N, C, H, W)


# --------------------------------------------------------------------------
# Pure-JAX reference mirroring the PyTorch forward
# --------------------------------------------------------------------------
def _reference(x, w1, w2):
    avg = jnp.mean(x, axis=(2, 3))                  # (N, C)
    mx = jnp.max(x, axis=(2, 3))                    # (N, C)

    def mlp(v):                                     # v: (N, C)
        h = jnp.maximum(v @ w1.T, 0.0)              # (N, C_r)
        return h @ w2.T                             # (N, C)

    att = mlp(avg) + mlp(mx)
    scale = jax.nn.sigmoid(att)[:, :, None, None]
    return x * scale


if __name__ == "__main__":
    key = jax.random.PRNGKey(0)

    # Case 1: lane-aligned spatial (H*W = 256, multiple of 128).
    N, C, H, W = 2, 64, 16, 16
    C_r = C // 16
    kx, k1, k2, key = jax.random.split(key, 4)
    x = jax.random.normal(kx, (N, C, H, W), dtype=jnp.float32)
    w1 = jax.random.normal(k1, (C_r, C), dtype=jnp.float32) * 0.1   # fc1 (1x1 conv)
    w2 = jax.random.normal(k2, (C, C_r), dtype=jnp.float32) * 0.1   # fc2 (1x1 conv)
    out = jax.block_until_ready(channel_attention(x, w1, w2))
    ref = _reference(x, w1, w2)
    assert out.shape == (N, C, H, W)
    assert jnp.allclose(out, ref, atol=1e-5, rtol=1e-5), "mismatch vs reference (aligned)"

    # Case 2: non-aligned spatial (H*W = 49) exercises the pad+mask path.
    N2, C2, H2, W2 = 2, 32, 7, 7
    C2_r = C2 // 8
    kx2, k3, k4, key = jax.random.split(key, 4)
    x2 = jax.random.normal(kx2, (N2, C2, H2, W2), dtype=jnp.float32)
    w1b = jax.random.normal(k3, (C2_r, C2), dtype=jnp.float32) * 0.1
    w2b = jax.random.normal(k4, (C2, C2_r), dtype=jnp.float32) * 0.1
    out2 = jax.block_until_ready(channel_attention(x2, w1b, w2b))
    ref2 = _reference(x2, w1b, w2b)
    assert out2.shape == (N2, C2, H2, W2)
    assert jnp.allclose(out2, ref2, atol=1e-5, rtol=1e-5), "mismatch vs reference (padded)"

    print("KERNEL_OK")
</pallas_src>

<mosaic_0001>
module attributes {stable_mosaic.version = 11 : i64} {
  func.func @_channel_attention_kernel(%arg0: i32, %arg1: memref<2x64x256xf32, #tpu.memory_space<vmem>>, %arg2: memref<4x64xf32, #tpu.memory_space<vmem>>, %arg3: memref<64x4xf32, #tpu.memory_space<vmem>>, %arg4: memref<2x64x256xf32, #tpu.memory_space<vmem>>) attributes {dimension_semantics = [#tpu.dimension_semantics<parallel>], iteration_bounds = array<i64: 1>, scalar_prefetch = 0 : i64, scratch_operands = 0 : i64, tpu.core_type = #tpu.core_type<tc>, window_params = [{transform_indices = @transform_0, window_bounds = array<i64: 2, 64, 256>}, {pipeline_mode = #tpu.pipeline_mode<synchronous>, transform_indices = @transform_1, window_bounds = array<i64: 4, 64>}, {pipeline_mode = #tpu.pipeline_mode<synchronous>, transform_indices = @transform_2, window_bounds = array<i64: 64, 4>}, {transform_indices = @transform_3, window_bounds = array<i64: 2, 64, 256>}]} {
    %c0 = arith.constant 0 : index
    %c0_0 = arith.constant 0 : index
    %c0_1 = arith.constant 0 : index
    %0 = vector.load %arg1[%c0, %c0_0, %c0_1] : memref<2x64x256xf32, #tpu.memory_space<vmem>>, vector<2x64x256xf32>
    %cst = arith.constant dense<0.000000e+00> : vector<2x64xf32>
    %1 = vector.multi_reduction <add>, %0, %cst [2] : vector<2x64x256xf32> to vector<2x64xf32>
    %cst_2 = arith.constant 3.906250e-03 : f32
    %2 = vector.broadcast %cst_2 : f32 to vector<2x64xf32>
    %3 = arith.mulf %1, %2 : vector<2x64xf32>
    %cst_3 = arith.constant dense<0xFF800000> : vector<2x64xf32>
    %4 = vector.multi_reduction <maximumf>, %0, %cst_3 [2] : vector<2x64x256xf32> to vector<2x64xf32>
    %5 = tpu.concatenate %3, %4 in 0 : vector<2x64xf32>, vector<2x64xf32> -> vector<4x64xf32>
    %c0_4 = arith.constant 0 : index
    %c0_5 = arith.constant 0 : index
    %6 = vector.load %arg2[%c0_4, %c0_5] : memref<4x64xf32, #tpu.memory_space<vmem>>, vector<4x64xf32>
    %c0_6 = arith.constant 0 : index
    %c0_7 = arith.constant 0 : index
    %7 = vector.load %arg3[%c0_6, %c0_7] : memref<64x4xf32, #tpu.memory_space<vmem>>, vector<64x4xf32>
    %8 = tpu.transpose %6, [1, 0] : vector<4x64xf32> -> vector<64x4xf32>
    %cst_8 = arith.constant dense<0.000000e+00> : vector<4x4xf32>
    %9 = tpu.matmul %5, %8, %cst_8 {dimension_numbers = #tpu.dot_dimension_numbers<[1], [0], [0], [1], [0, 0, 1, 1], [], []>} : vector<4x64xf32>, vector<64x4xf32>, vector<4x4xf32> -> vector<4x4xf32>
    %cst_9 = arith.constant 0.000000e+00 : f32
    %10 = vector.broadcast %cst_9 : f32 to vector<4x4xf32>
    %11 = arith.maximumf %9, %10 : vector<4x4xf32>
    %12 = tpu.transpose %7, [1, 0] : vector<64x4xf32> -> vector<4x64xf32>
    %cst_10 = arith.constant dense<0.000000e+00> : vector<4x64xf32>
    %13 = tpu.matmul %11, %12, %cst_10 {dimension_numbers = #tpu.dot_dimension_numbers<[1], [0], [0], [1], [0, 0, 1, 1], [], []>} : vector<4x4xf32>, vector<4x64xf32>, vector<4x64xf32> -> vector<4x64xf32>
    %14 = vector.extract_strided_slice %13 {offsets = [0, 0], sizes = [2, 64], strides = [1, 1]} : vector<4x64xf32> to vector<2x64xf32>
    %15 = vector.extract_strided_slice %13 {offsets = [2, 0], sizes = [2, 64], strides = [1, 1]} : vector<4x64xf32> to vector<2x64xf32>
    %16 = arith.addf %14, %15 : vector<2x64xf32>
    %17 = arith.negf %16 : vector<2x64xf32>
    %18 = math.exp %17 : vector<2x64xf32>
    %cst_11 = arith.constant 1.000000e+00 : f32
    %19 = vector.broadcast %cst_11 : f32 to vector<2x64xf32>
    %20 = arith.addf %19, %18 : vector<2x64xf32>
    %21 = arith.divf %19, %20 : vector<2x64xf32>
    %22 = vector.shape_cast %21 : vector<2x64xf32> to vector<2x64x1xf32>
    %23 = vector.broadcast %22 : vector<2x64x1xf32> to vector<2x64x256xf32>
    %24 = arith.mulf %0, %23 : vector<2x64x256xf32>
    %c0_12 = arith.constant 0 : index
    %c0_13 = arith.constant 0 : index
    %c0_14 = arith.constant 0 : index
    %25 = vector.load %arg4[%c0_12, %c0_13, %c0_14] : memref<2x64x256xf32, #tpu.memory_space<vmem>>, vector<2x64x256xf32>
    tpu.vector_store %arg4[%c0_12, %c0_13, %c0_14], %24 {strides = array<i32>} : memref<2x64x256xf32, #tpu.memory_space<vmem>>, vector<2x64x256xf32>,
    return
  }
  func.func @transform_0(%arg0: i32) -> (i32, i32, i32) {
    %c0_i32 = arith.constant 0 : i32
    %c0_i32_0 = arith.constant 0 : i32
    %c0_i32_1 = arith.constant 0 : i32
    return %arg0, %c0_i32, %c0_i32_0 : i32, i32, i32
  }
  func.func @transform_1(%arg0: i32) -> (i32, i32) {
    %c0_i32 = arith.constant 0 : i32
    %c0_i32_0 = arith.constant 0 : i32
    %c0_i32_1 = arith.constant 0 : i32
    return %c0_i32, %c0_i32_0 : i32, i32
  }
  func.func @transform_2(%arg0: i32) -> (i32, i32) {
    %c0_i32 = arith.constant 0 : i32
    %c0_i32_0 = arith.constant 0 : i32
    %c0_i32_1 = arith.constant 0 : i32
    return %c0_i32, %c0_i32_0 : i32, i32
  }
  func.func @transform_3(%arg0: i32) -> (i32, i32, i32) {
    %c0_i32 = arith.constant 0 : i32
    %c0_i32_0 = arith.constant 0 : i32
    %c0_i32_1 = arith.constant 0 : i32
    return %arg0, %c0_i32, %c0_i32_0 : i32, i32, i32
  }
}

</mosaic_0001>

<bundles_post_ra>
// kernel: tpu_custom_call.1
= control target key start
LH: loop header
LB: loop body
LE: loop exit
PB: predicated region body
PF: predicated region fallthrough
CT: control target
= control target key end

     0   :  { %8 = vsyncpa [#allocation3], 0  ;;  %s1188_s0 = inlined_call_operand.hbm [shape: f32[2,64,256], index: 0, kind: input, shape index: {}]   ;;  %s1189_s1 = inlined_call_operand.vmem [shape: f32[4,64], index: 1, kind: input, shape index: {}]   ;;  %s1190_s2 = inlined_call_operand.vmem [shape: f32[64,4], index: 2, kind: input, shape index: {}]   ;;  %s1191_s3 = inlined_call_operand.hbm [shape: f32[2,64,256], index: 3, kind: output, shape index: {}]  }
   0x1   :  { %9 = vsyncpa [#allocation4], 0  ;;  %s832_s12 = smov [#allocation2]  }
   0x2   :  { %s15_s13 = sshll.u32 %s832_s12, 4  ;;  %s16_s13 = int_to_ptr.vmem [resolvable:$true] %s15_s13 }
   0x3   :  { %s796_s14 = scalar_lea.vmem %s16_s13, 4096  ;;  %p801_p1 = scmp.lt.s32.totalorder %s16_s13, %s16_s13 }
   0x4   :  { %p797_p0 = scmp.ne.s32.totalorder %s16_s13, %s796_s14  ;;  %p802_p2 = scmp.lt.s32.totalorder %s796_s14, %s796_s14 }
   0x6   :  { %p803_p3 = por %p802_p2, %p801_p1 }
   0x8   :  { %p804_p4 = pnand %p803_p3, %p797_p0 }
   0xa   :  { %807 = shalt.err (!%p804_p4)
}
   0xb   :  { %s833_s15 = smov 256   ;;  %s834_s16 = smov 16  }
   0xc   :  { %21 = dma.hbm_to_vmem [thread:$0]  %s1188_s0, 4096, %s16_s13, [#allocation3], %s833_s15, %s833_s15, %s834_s16  }
   0xd   :  { %828 = dma.done.wait [#allocation3], 4096  }
   0xe   :  { %829 = vsyncadd [#allocation3], 4294963200  ;;  %v864_v0 = vld [vmem:[#allocation2 + $0x80] sm:$0xff]  ;;  %v866_v1 = vld [vmem:[#allocation2 + $0x88] sm:$0xff]  ;;  %vm394_vm0 = vcmask 523264   ;;  %vm836_vm1 = vmmov 0  }
   0xf   :  { %v868_v2 = vld [vmem:[#allocation2] sm:$0xff]  ;;  %v85_v3 = vadd.f32 %v866_v1, %v864_v0  ;;  %v872_v4 = vld [vmem:[#allocation2 + $0x8] sm:$0xff]  ;;  %v874_v5 = vld [vmem:[#allocation2 + $0x90] sm:$0xff]  ;;  %v149_v27 = vmax.f32 %v864_v0, %v866_v1  ;;  %vm472_vm2 = vcmask 31744   ;;  %vm200_vm3 = vcmask 130112  }
  0x10   :  { %1205 = vst [vmem:[#allocation8_spill] sm:$0xff] %v874_v5  ;;  %v876_v6 = vld [vmem:[#allocation2 + $0x98] sm:$0xff]  ;;  %v61_v7 = vadd.f32 %v872_v4, %v868_v2  ;;  %v880_v8 = vld [vmem:[#allocation2 + $0x10] sm:$0xff]  ;;  %v888_v12 = vld [vmem:[#allocation2 + $0xa0] sm:$0xff]  ;;  %v125_v25 = vmax.f32 %v868_v2, %v872_v4  ;;  %vm207_vm4 = vcmask 195712   ;;  %vm214_vm5 = vcmask 261312  }
  0x11   :  { %1206 = vst [vmem:[#allocation9_spill] sm:$0xff] %v876_v6  ;;  %v882_v9 = vld [vmem:[#allocation2 + $0x18] sm:$0xff]  ;;  %86 = vadd.xlane.f32.xlu1 %v85_v3  ;;  %v88_v10 = vadd.f32 %v876_v6, %v874_v5  ;;  %v890_v13 = vld [vmem:[#allocation2 + $0xa8] sm:$0xff]  ;;  %v892_v14 = vld [vmem:[#allocation2 + $0x20] sm:$0xff]  ;;  %v152_v26 = vmax.f32 %v874_v5, %v876_v6  ;;  %v835_v3 = vmov 0.0   ;;  %vm221_vm6 = vcmask 326912  }
  0x12   :  { %62 = vadd.xlane.f32.xlu0 %v61_v7  ;;  %v64_v11 = vadd.f32 %v882_v9, %v880_v8  ;;  %1207 = vst [vmem:[#allocation10_spill] sm:$0xff] %v890_v13  ;;  %v894_v15 = vld [vmem:[#allocation2 + $0x28] sm:$0xff]  ;;  %v91_v16 = vadd.f32 %v890_v13, %v888_v12  ;;  %v900_v18 = vld [vmem:[#allocation2 + $0xb0] sm:$0xff]  ;;  %v902_v19 = vld [vmem:[#allocation2 + $0xb8] sm:$0xff]  ;;  %v128_v24 = vmax.f32 %v880_v8, %v882_v9  ;;  %vm228_vm7 = vcmask 392512  }
  0x13   :  { %v67_v17 = vadd.f32 %v894_v15, %v892_v14  ;;  %1208 = vst [vmem:[#allocation11_spill] sm:$0xff] %v900_v18  ;;  %1209 = vst [vmem:[#allocation12_spill] sm:$0xff] %v902_v19  ;;  %v904_v20 = vld [vmem:[#allocation2 + $0x30] sm:$0xff]  ;;  %v906_v21 = vld [vmem:[#allocation2 + $0x38] sm:$0xff]  ;;  %v94_v22 = vadd.f32 %v902_v19, %v900_v18  ;;  %v155_v34 = vmax.f32 %v888_v12, %v890_v13  ;;  %754 = vmatprep.subr.mxu0 %v835_v3  ;;  %vm235_vm8 = vcmask 458112  }
  0x14   :  { %v70_v23 = vadd.f32 %v906_v21, %v904_v20  ;;  %v920_v28 = vld [vmem:[#allocation2 + $0xc0] sm:$0xff]  ;;  %v922_v29 = vld [vmem:[#allocation2 + $0xc8] sm:$0xff]  ;;  %v131_v35 = vmax.f32 %v892_v14, %v894_v15  ;;  %v936_v36 = vld [vmem:[#allocation2 + $0xd0] sm:$0xff]  ;;  %v158_v42 = vmax.f32 %v900_v18, %v902_v19  ;;  %v134_v43 = vmax.f32 %v904_v20, %v906_v21  ;;  %759 = vmatprep.subr.mxu1 %v835_v3 }
  0x15   :  { %89 = vadd.xlane.f32.xlu1 %v88_v10  ;;  %1210 = vst [vmem:[#allocation13_spill] sm:$0xff] %v920_v28  ;;  %1211 = vst [vmem:[#allocation14_spill] sm:$0xff] %v922_v29  ;;  %v924_v30 = vld [vmem:[#allocation2 + $0x40] sm:$0xff]  ;;  %v926_v31 = vld [vmem:[#allocation2 + $0x48] sm:$0xff]  ;;  %v97_v32 = vadd.f32 %v922_v29, %v920_v28  ;;  %v161_v50 = vmax.f32 %v920_v28, %v922_v29  ;;  %756 = vmatprep.mubr.msk.f32.mxu0 %vm836_vm1, %v835_v3  ;;  %vm242_vm9 = vcmask 523712   ;;  %vm283_vm10 = vcmask 1041409  }
  0x16   :  { %65 = vadd.xlane.f32.xlu0 %v64_v11  ;;  %v73_v33 = vadd.f32 %v926_v31, %v924_v30  ;;  %1212 = vst [vmem:[#allocation15_spill] sm:$0xff] %v936_v36  ;;  %v938_v37 = vld [vmem:[#allocation2 + $0xd8] sm:$0xff]  ;;  %v940_v38 = vld [vmem:[#allocation2 + $0x50] sm:$0xff]  ;;  %v952_v44 = vld [vmem:[#allocation2 + $0xe0] sm:$0xff]  ;;  %v137_v51 = vmax.f32 %v924_v30, %v926_v31  ;;  %775 = vmatprep.mubr.msk.f32.mxu1 %vm836_vm1, %v835_v3  ;;  %vm380_vm11 = vcmask 1043459   ;;  %vm383_vm12 = vcmask 1041408  }
  0x17   :  { %1213 = vst [vmem:[#allocation16_spill] sm:$0xff] %v938_v37  ;;  %v942_v39 = vld [vmem:[#allocation2 + $0x58] sm:$0xff]  ;;  %v100_v40 = vadd.f32 %v938_v37, %v936_v36  ;;  %1214 = vst [vmem:[#allocation17_spill] sm:$0xff] %v952_v44  ;;  %v954_v45 = vld [vmem:[#allocation2 + $0xe8] sm:$0xff]  ;;  %v164_v58 = vmax.f32 %v936_v36, %v938_v37 }
  0x18   :  { %v76_v41 = vadd.f32 %v942_v39, %v940_v38  ;;  %1215 = vst [vmem:[#allocation18_spill] sm:$0xff] %v954_v45  ;;  %v956_v46 = vld [vmem:[#allocation2 + $0x60] sm:$0xff]  ;;  %v958_v47 = vld [vmem:[#allocation2 + $0x68] sm:$0xff]  ;;  %v103_v48 = vadd.f32 %v954_v45, %v952_v44  ;;  %v968_v52 = vld [vmem:[#allocation2 + $0xf0] sm:$0xff]  ;;  %v140_v59 = vmax.f32 %v940_v38, %v942_v39  ;;  %v167_v60 = vmax.f32 %v952_v44, %v954_v45 }
  0x19   :  { %92 = vadd.xlane.f32.xlu1 %v91_v16  ;;  %v79_v49 = vadd.f32 %v958_v47, %v956_v46  ;;  %1216 = vst [vmem:[#allocation19_spill] sm:$0xff] %v968_v52  ;;  %v970_v53 = vld [vmem:[#allocation2 + $0xf8] sm:$0xff]  ;;  %v972_v54 = vld [vmem:[#allocation2 + $0x70] sm:$0xff]  ;;  %v143_v61 = vmax.f32 %v956_v46, %v958_v47  ;;  %v385_v7 = vld [vmem:[%s1189_s1] sm:$0xf] }
  0x1a   :  { %68 = vadd.xlane.f32.xlu0 %v67_v17  ;;  %1217 = vst [vmem:[#allocation20_spill] sm:$0xff] %v970_v53  ;;  %v974_v55 = vld [vmem:[#allocation2 + $0x78] sm:$0xff]  ;;  %v106_v56 = vadd.f32 %v970_v53, %v968_v52  ;;  %v170_v62 = vmax.f32 %v968_v52, %v970_v53  ;;  %755 = vmatpush3.xpose.msk.msra.mxu0 %vm394_vm0, %v385_v7  ;;  %v392_v11 = vld [vmem:[%s1190_s2 + $0x30] sm:$0xff]  ;;  %v391_v16 = vld [vmem:[%s1190_s2 + $0x28] sm:$0xff] }
  0x1b   :  { %v82_v57 = vadd.f32 %v974_v55, %v972_v54  ;;  %v146_v63 = vmax.f32 %v972_v54, %v974_v55  ;;  %v393_v10 = vld [vmem:[%s1190_s2 + $0x38] sm:$0xff]  ;;  %v390_v17 = vld [vmem:[%s1190_s2 + $0x20] sm:$0xff] }
  0x1c   :  { %760 = vmatpush3.xpose.msk.msra.mxu1 %vm472_vm2, %v393_v10 }
  0x1d   :  { %95 = vadd.xlane.f32.xlu1 %v94_v22  ;;  %761 = vmatprep.subr.mxu1 %v835_v3  ;;  %v389_v22 = vld [vmem:[%s1190_s2 + $0x18] sm:$0xff] }
  0x1e   :  { %71 = vadd.xlane.f32.xlu0 %v70_v23  ;;  %v388_v23 = vld [vmem:[%s1190_s2 + $0x10] sm:$0xff] }
  0x20   :  { %762 = vmatpush3.xpose.msk.msra.mxu1 %vm472_vm2, %v392_v11 }
  0x21   :  { %129 = vmax.xlane.f32.xlu1 %v128_v24  ;;  %763 = vmatprep.subr.mxu1 %v835_v3  ;;  %v387_v24 = vld [vmem:[%s1190_s2 + $0x8] sm:$0xff] }
  0x22   :  { %126 = vmax.xlane.f32.xlu0 %v125_v25 }
  0x24   :  { %764 = vmatpush3.xpose.msk.msra.mxu1 %vm472_vm2, %v391_v16 }
  0x25   :  { %153 = vmax.xlane.f32.xlu1 %v152_v26  ;;  %765 = vmatprep.subr.mxu1 %v835_v3 }
  0x26   :  { %150 = vmax.xlane.f32.xlu0 %v149_v27 }
  0x28   :  { %766 = vmatpush3.xpose.msk.msra.mxu1 %vm472_vm2, %v390_v17 }
  0x29   :  { %98 = vadd.xlane.f32.xlu1 %v97_v32  ;;  %767 = vmatprep.subr.mxu1 %v835_v3 }
  0x2a   :  { %74 = vadd.xlane.f32.xlu0 %v73_v33 }
  0x2c   :  { %768 = vmatpush3.xpose.msk.msra.mxu1 %vm472_vm2, %v389_v22 }
  0x2d   :  { %156 = vmax.xlane.f32.xlu1 %v155_v34  ;;  %769 = vmatprep.subr.mxu1 %v835_v3 }
  0x2e   :  { %132 = vmax.xlane.f32.xlu0 %v131_v35 }
  0x30   :  { %770 = vmatpush3.xpose.msk.msra.mxu1 %vm472_vm2, %v388_v23 }
  0x31   :  { %101 = vadd.xlane.f32.xlu1 %v100_v40  ;;  %771 = vmatprep.subr.mxu1 %v835_v3 }
  0x32   :  { %77 = vadd.xlane.f32.xlu0 %v76_v41 }
  0x34   :  { %772 = vmatpush3.xpose.msk.msra.mxu1 %vm472_vm2, %v387_v24 }
  0x35   :  { %159 = vmax.xlane.f32.xlu1 %v158_v42  ;;  %773 = vmatprep.subr.mxu1 %v835_v3 }
  0x36   :  { %135 = vmax.xlane.f32.xlu0 %v134_v43 }
  0x39   :  { %104 = vadd.xlane.f32.xlu1 %v103_v48 }
  0x3a   :  { %80 = vadd.xlane.f32.xlu0 %v79_v49 }
  0x3d   :  { %162 = vmax.xlane.f32.xlu1 %v161_v50 }
  0x3e   :  { %138 = vmax.xlane.f32.xlu0 %v137_v51 }
  0x41   :  { %107 = vadd.xlane.f32.xlu1 %v106_v56 }
  0x42   :  { %83 = vadd.xlane.f32.xlu0 %v82_v57  ;;  %v189_v57 = vlaneseq }
  0x45   :  { %165 = vmax.xlane.f32.xlu1 %v164_v58 }
  0x46   :  { %141 = vmax.xlane.f32.xlu0 %v140_v59 }
  0x49   :  { %168 = vmax.xlane.f32.xlu1 %v167_v60  ;;  %v190_v60 = vand.u32 127, %v189_v57 }
  0x4a   :  { %144 = vmax.xlane.f32.xlu0 %v143_v61  ;;  %v1036_v61 = vshrl.u32 %v189_v57, 7 }
  0x4b   :  { %v202_v3 = vadd.s32 4294967280, %v190_v60  ;;  %v209_v10 = vadd.s32 4294967272, %v190_v60  ;;  %v216_v53 = vadd.s32 4294967264, %v190_v60  ;;  %v223_v52 = vadd.s32 4294967256, %v190_v60 }
  0x4c   :  { %v1043_v11 = vsub.s32 %v190_v60, %v1036_v61  ;;  %v230_v44 = vadd.s32 4294967248, %v190_v60 }
  0x4d   :  { %171 = vmax.xlane.f32.xlu1 %v170_v62  ;;  %v1049_v23 = vsub.s32 %v202_v3, %v1036_v61  ;;  %v1052_v45 = vsub.s32 %v209_v10, %v1036_v61 }
  0x4e   :  { %147 = vmax.xlane.f32.xlu0 %v146_v63  ;;  %v195_v63 = vadd.s32 4294967288, %v190_v60 }
  0x50   :  { %v1046_v17 = vsub.s32 %v195_v63, %v1036_v61 }
  0x9a   :  { %v87_v25 = vpop.xlane.xlu1 %86 }
  0x9b   :  { %v63_v26 = vpop.xlane.xlu0 %62  ;;  %v117_v37 = vmul.f32 0.00390625, %v87_v25 }
  0x9c   :  { %v109_v19 = vmul.f32 0.00390625, %v63_v26  ;;  %v1064_v26 = vsub.s32 %v223_v52, %v1036_v61 }
  0x9e   :  { %v90_v27 = vpop.xlane.xlu1 %89 }
  0x9f   :  { %v66_v32 = vpop.xlane.xlu0 %65  ;;  %v118_v22 = vmul.f32 0.00390625, %v90_v27  ;;  %v237_v27 = vadd.s32 4294967240, %v190_v60 }
  0xa0   :  { %v110_v57 = vmul.f32 0.00390625, %v66_v32 }
  0xa1   :  { %v251_v3 = vrot.slane %v118_v22, %v1046_v17  ;;  %v1069_v22 = vsub.s32 %v230_v44, %v1036_v61 }
  0xa2   :  { %v93_v33 = vpop.xlane.xlu1 %92  ;;  %v199_v25 = vrot.slane %v110_v57, %v1046_v17 }
  0xa3   :  { %v69_v34 = vpop.xlane.xlu0 %68  ;;  %v119_v36 = vmul.f32 0.00390625, %v93_v33  ;;  %v1061_v33 = vsub.s32 %v216_v53, %v1036_v61  ;;  %v1075_v53 = vsub.s32 %v237_v27, %v1036_v61 }
  0xa4   :  { %v111_v18 = vmul.f32 0.00390625, %v69_v34  ;;  %v247_v34 = vrot.slane %v117_v37, %v1043_v11 }
  0xa6   :  { %v96_v35 = vpop.xlane.xlu1 %95  ;;  %v206_v6 = vrot.slane %v111_v18, %v1049_v23 }
  0xa7   :  { %v72_v40 = vpop.xlane.xlu0 %71  ;;  %v120_v63 = vmul.f32 0.00390625, %v96_v35  ;;  %v256_v35 = vrot.slane %v119_v36, %v1049_v23 }
  0xa8   :  { %v112_v28 = vmul.f32 0.00390625, %v72_v40  ;;  %v194_v40 = vrot.slane %v109_v19, %v1043_v11 }
  0xa9   :  { %v261_v57 = vrot.slane %v120_v63, %v1052_v45 }
  0xaa   :  { %v1024_v41 = vpop.xlane.xlu1 %129  ;;  %v213_v37 = vrot.slane %v112_v28, %v1052_v45  ;;  %v201_v18 = vsel %vm200_vm3, %v199_v25, %v194_v40 }
  0xab   :  { %v1026_v42 = vpop.xlane.xlu0 %126  ;;  %v309_v36 = vrot.slane %v1024_v41, %v1046_v17 }
  0xac   :  { %v305_v44 = vrot.slane %v1026_v42, %v1043_v11  ;;  %v208_v42 = vsel %vm207_vm4, %v206_v6, %v201_v18 }
  0xae   :  { %v1028_v43 = vpop.xlane.xlu1 %153 }
  0xaf   :  { %v1030_v48 = vpop.xlane.xlu0 %150 }
  0xb0   :  { %v344_v63 = vrot.slane %v1030_v48, %v1043_v11  ;;  %v310_v48 = vsel %vm200_vm3, %v309_v36, %v305_v44 }
  0xb2   :  { %v99_v49 = vpop.xlane.xlu1 %98 }
  0xb3   :  { %v75_v50 = vpop.xlane.xlu0 %74  ;;  %v121_v10 = vmul.f32 0.00390625, %v99_v49  ;;  %v252_v49 = vsel %vm200_vm3, %v251_v3, %v247_v34 }
  0xb4   :  { %v113_v60 = vmul.f32 0.00390625, %v75_v50  ;;  %v348_v50 = vrot.slane %v1028_v43, %v1046_v17  ;;  %v257_v28 = vsel %vm207_vm4, %v256_v35, %v252_v49  ;;  %v215_v43 = vsel %vm214_vm5, %v213_v37, %v208_v42 }
  0xb5   :  { %v266_v27 = vrot.slane %v121_v10, %v1061_v33  ;;  %v262_v5 = vsel %vm214_vm5, %v261_v57, %v257_v28 }
  0xb6   :  { %v1032_v51 = vpop.xlane.xlu1 %156  ;;  %v220_v41 = vrot.slane %v113_v60, %v1061_v33  ;;  %v349_v35 = vsel %vm200_vm3, %v348_v50, %v344_v63 }
  0xb7   :  { %v1034_v56 = vpop.xlane.xlu0 %132  ;;  %v353_v11 = vrot.slane %v1032_v51, %v1049_v23 }
  0xb8   :  { %v314_v6 = vrot.slane %v1034_v56, %v1049_v23 }
  0xb9   :  { %v354_v49 = vsel %vm207_vm4, %v353_v11, %v349_v35 }
  0xba   :  { %v102_v58 = vpop.xlane.xlu1 %101 }
  0xbb   :  { %v78_v59 = vpop.xlane.xlu0 %77  ;;  %v122_v3 = vmul.f32 0.00390625, %v102_v58  ;;  %v267_v58 = vsel %vm221_vm6, %v266_v27, %v262_v5 }
  0xbc   :  { %v114_v34 = vmul.f32 0.00390625, %v78_v59 }
  0xbe   :  { %v1038_v62 = vpop.xlane.xlu1 %159  ;;  %v227_v60 = vrot.slane %v114_v34, %v1064_v26 }
  0xbf   :  { %v1040_v7 = vpop.xlane.xlu0 %135  ;;  %v358_v51 = vrot.slane %v1038_v62, %v1052_v45 }
  0xc0   :  { %v319_v57 = vrot.slane %v1040_v7, %v1052_v45  ;;  %v315_v45 = vsel %vm207_vm4, %v314_v6, %v310_v48 }
  0xc1   :  { %v359_v63 = vsel %vm214_vm5, %v358_v51, %v354_v49  ;;  %v582_v49 = vsub.s32 0, %v1036_v61 }
  0xc2   :  { %v105_v16 = vpop.xlane.xlu1 %104 }
  0xc3   :  { %v81_v24 = vpop.xlane.xlu0 %80  ;;  %v123_v25 = vmul.f32 0.00390625, %v105_v16  ;;  %v222_v16 = vsel %vm221_vm6, %v220_v41, %v215_v43 }
  0xc4   :  { %v115_v40 = vmul.f32 0.00390625, %v81_v24  ;;  %v271_v24 = vrot.slane %v122_v3, %v1064_v26  ;;  %v229_v50 = vsel %vm228_vm7, %v227_v60, %v222_v16 }
  0xc5   :  { %v276_v5 = vrot.slane %v123_v25, %v1069_v22 }
  0xc6   :  { %v1054_v29 = vpop.xlane.xlu1 %162 }
  0xc7   :  { %v1057_v32 = vpop.xlane.xlu0 %138  ;;  %v363_v56 = vrot.slane %v1054_v29, %v1061_v33  ;;  %v272_v29 = vsel %vm228_vm7, %v271_v24, %v267_v58 }
  0xc8   :  { %v324_v37 = vrot.slane %v1057_v32, %v1061_v33  ;;  %v320_v33 = vsel %vm214_vm5, %v319_v57, %v315_v45 }
  0xc9   :  { %v364_v28 = vsel %vm221_vm6, %v363_v56, %v359_v63 }
  0xca   :  { %v108_v52 = vpop.xlane.xlu1 %107 }
  0xcb   :  { %v84_v19 = vpop.xlane.xlu0 %83  ;;  %v124_v17 = vmul.f32 0.00390625, %v108_v52  ;;  %v234_v52 = vrot.slane %v115_v40, %v1069_v22 }
  0xcc   :  { %v116_v59 = vmul.f32 0.00390625, %v84_v19 }
  0xcd   :  { %v281_v36 = vrot.slane %v124_v17, %v1075_v53  ;;  %v236_v27 = vsel %vm235_vm8, %v234_v52, %v229_v50 }
  0xce   :  { %v166_v13 = vpop.xlane.xlu1 %165  ;;  %v241_v7 = vrot.slane %v116_v59, %v1075_v53  ;;  %v386_v59 = vld [vmem:[%s1190_s2] sm:$0xff]  ;;  %s837_s2 = smov [#allocation5]  }
  0xcf   :  { %v142_v10 = vpop.xlane.xlu0 %141  ;;  %v368_v62 = vrot.slane %v166_v13, %v1064_v26  ;;  %v277_v13 = vsel %vm235_vm8, %v276_v5, %v272_v29  ;;  %774 = vmatpush3.xpose.msk.msra.mxu1 %vm472_vm2, %v386_v59  ;;  %s719_s8 = sshll.u32 %s837_s2, 4  ;;  %s720_s8 = int_to_ptr.vmem [resolvable:$true] %s719_s8 }
  0xd0   :  { %v329_v19 = vrot.slane %v142_v10, %v1064_v26  ;;  %v325_v26 = vsel %vm221_vm6, %v324_v37, %v320_v33  ;;  %v282_v3 = vsel %vm242_vm9, %v281_v36, %v277_v13  ;;  %s808_s9 = scalar_lea.vmem %s720_s8, 4096  ;;  %p813_p6 = scmp.lt.s32.totalorder %s720_s8, %s720_s8 }
  0xd1   :  { %v369_v34 = vsel %vm228_vm7, %v368_v62, %v364_v28  ;;  %v617_v62 = vsub.s32 1, %v1036_v61  ;;  %p809_p5 = scmp.ne.s32.totalorder %s720_s8, %s808_s9  ;;  %p814_p7 = scmp.lt.s32.totalorder %s808_s9, %s808_s9 }
  0xd2   :  { %v169_v23 = vpop.xlane.xlu1 %168  ;;  %v330_v40 = vsel %vm228_vm7, %v329_v19, %v325_v26 }
  0xd3   :  { %v145_v44 = vpop.xlane.xlu0 %144  ;;  %v373_v18 = vrot.slane %v169_v23, %v1069_v22  ;;  %p815_p8 = por %p814_p7, %p813_p6 }
  0xd4   :  { %v334_v32 = vrot.slane %v145_v44, %v1069_v22  ;;  %v243_v22 = vsel %vm242_vm9, %v241_v7, %v236_v27 }
  0xd5   :  { %v374_v43 = vsel %vm235_vm8, %v373_v18, %v369_v34  ;;  %v284_v35 = vsel %vm283_vm10, %v282_v3, %v243_v22  ;;  %v1220_v22 = vld [vmem:[#allocation9_spill] sm:$0xff]  ;;  %p816_p9 = pnand %p815_p8, %p809_p5 }
  0xd6   :  { %v172_v41 = vpop.xlane.xlu1 %171  ;;  %v335_v11 = vsel %vm235_vm8, %v334_v32, %v330_v40 }
  0xd7   :  { %v378_v42 = vrot.slane %v172_v41, %v1075_v53  ;;  %v148_v25 = vpop.xlane.xlu0 %147 }
  0xd8   :  { %v339_v48 = vrot.slane %v148_v25, %v1075_v53 }
  0xd9   :  { %v379_v17 = vsel %vm242_vm9, %v378_v42, %v374_v43  ;;  %v1218_v42 = vld [vmem:[#allocation10_spill] sm:$0xff]  ;;  %v1221_v43 = vld [vmem:[#allocation13_spill] sm:$0xff] }
  0xda   :  { %v340_v10 = vsel %vm242_vm9, %v339_v48, %v335_v11  ;;  %v1222_v11 = vld [vmem:[#allocation14_spill] sm:$0xff] }
  0xdb   :  { %v381_v58 = vsel %vm380_vm11, %v379_v17, %v340_v10  ;;  %v1223_v17 = vld [vmem:[#allocation11_spill] sm:$0xff] }
  0xdc   :  { %v384_v6 = vsel %vm383_vm12, %v284_v35, %v381_v58  ;;  %v1224_v35 = vld [vmem:[#allocation12_spill] sm:$0xff] }
  0xdd   :  { %757 = vmatmul.mubr.msk.f32.vlgmr.msra.gmra.mxu0 %vm394_vm0, %v384_v6  ;;  %v1225_v6 = vld [vmem:[#allocation17_spill] sm:$0xff] }
 0x19d   :  { %v467_v53 = vpop.f32.mrf.mxu0 }
 0x19e   :  { %v471_v16 = vmax.f32 %v467_v53, 0.0  ;;  %v1226_v53 = vld [vmem:[#allocation18_spill] sm:$0xff] }
 0x19f   :  { %v758_v24 = vpop.f32.mrf.mxu0 }
 0x1a0   :  { %776 = vmatmul.mubr.msk.f32.vlgmr.msra.gmra.mxu1 %vm472_vm2, %v471_v16 }
 0x260   :  { %v566_v60 = vpop.f32.mrf.mxu1 }
 0x261   :  { %v571_v51 = vrot.slane %v566_v60, 2 }
 0x262   :  { %v777_v57 = vpop.f32.mrf.mxu1 }
 0x263   :  { %v573_v5 = vadd.f32 %v571_v51, %v566_v60  ;;  %v1227_v60 = vld [vmem:[#allocation15_spill] sm:$0xff]  ;;  %v1228_v57 = vld [vmem:[#allocation16_spill] sm:$0xff] }
 0x265   :  { %v742_v52 = vmul.f32 -1.442695, %v573_v5 }
 0x267   :  { %784 = vpow2.f32 %v742_v52 }
 0x274   :  { %v785_v56 = vpop.eup %784 }
 0x275   :  { %v577_v23 = vadd.f32 1.0, %v785_v56  ;;  %v1229_v56 = vld [vmem:[#allocation19_spill] sm:$0xff] }
 0x277   :  { %786 = vrcp.f32 %v577_v23 }
 0x284   :  { %v787_v37 = vpop.eup %786 }
 0x285   :  { %v583_v36 = vrot.slane %v787_v37, %v582_v49  ;;  %v618_v44 = vrot.slane %v787_v37, %v617_v62  ;;  %v1230_v49 = vld [vmem:[#allocation20_spill] sm:$0xff] }
 0x287   :  { %589 = vbcast.lane.b32.xlu1 %v583_v36, 264  ;;  %585 = vbcast.lane.b32.xlu0 %v583_v36, 256 }
 0x28b   :  { %593 = vbcast.lane.b32.xlu1 %v583_v36, 272  ;;  %601 = vbcast.lane.b32.xlu0 %v583_v36, 288 }
 0x28f   :  { %597 = vbcast.lane.b32.xlu1 %v583_v36, 280  ;;  %609 = vbcast.lane.b32.xlu0 %v583_v36, 304 }
 0x293   :  { %605 = vbcast.lane.b32.xlu1 %v583_v36, 296  ;;  %620 = vbcast.lane.b32.xlu0 %v618_v44, 256 }
 0x297   :  { %613 = vbcast.lane.b32.xlu1 %v583_v36, 312  ;;  %628 = vbcast.lane.b32.xlu0 %v618_v44, 272 }
 0x29b   :  { %624 = vbcast.lane.b32.xlu1 %v618_v44, 264  ;;  %636 = vbcast.lane.b32.xlu0 %v618_v44, 288 }
 0x29f   :  { %632 = vbcast.lane.b32.xlu1 %v618_v44, 280  ;;  %644 = vbcast.lane.b32.xlu0 %v618_v44, 304 }
 0x2a3   :  { %640 = vbcast.lane.b32.xlu1 %v618_v44, 296 }
 0x2a7   :  { %648 = vbcast.lane.b32.xlu1 %v618_v44, 312 }
 0x2f9   :  { %v590_v45 = vpop.permute.xlu1 %589  ;;  %v586_v7 = vpop.permute.xlu0 %585 }
 0x2fa   :  { %v652_v19 = vmul.f32 %v590_v45, %v880_v8  ;;  %v653_v18 = vmul.f32 %v590_v45, %v882_v9  ;;  %v650_v61 = vmul.f32 %v586_v7, %v868_v2  ;;  %v651_v29 = vmul.f32 %v586_v7, %v872_v4 }
 0x2fc   :  { %684 = vst [vmem:[#allocation5 + $0x10] sm:$0xff] %v652_v19  ;;  %685 = vst [vmem:[#allocation5 + $0x18] sm:$0xff] %v653_v18 }
 0x2fd   :  { %682 = vst [vmem:[#allocation5] sm:$0xff] %v650_v61  ;;  %683 = vst [vmem:[#allocation5 + $0x8] sm:$0xff] %v651_v29  ;;  %v594_v50 = vpop.permute.xlu1 %593  ;;  %v602_v63 = vpop.permute.xlu0 %601 }
 0x2fe   :  { %v654_v32 = vmul.f32 %v594_v50, %v892_v14  ;;  %v655_v33 = vmul.f32 %v594_v50, %v894_v15  ;;  %v658_v13 = vmul.f32 %v602_v63, %v924_v30  ;;  %v659_v8 = vmul.f32 %v602_v63, %v926_v31 }
 0x300   :  { %686 = vst [vmem:[#allocation5 + $0x20] sm:$0xff] %v654_v32  ;;  %687 = vst [vmem:[#allocation5 + $0x28] sm:$0xff] %v655_v33 }
 0x301   :  { %690 = vst [vmem:[#allocation5 + $0x40] sm:$0xff] %v658_v13  ;;  %691 = vst [vmem:[#allocation5 + $0x48] sm:$0xff] %v659_v8  ;;  %v598_v2 = vpop.permute.xlu1 %597  ;;  %v610_v4 = vpop.permute.xlu0 %609 }
 0x302   :  { %v656_v9 = vmul.f32 %v598_v2, %v904_v20  ;;  %v657_v27 = vmul.f32 %v598_v2, %v906_v21  ;;  %v662_v28 = vmul.f32 %v610_v4, %v956_v46  ;;  %v663_v14 = vmul.f32 %v610_v4, %v958_v47 }
 0x304   :  { %688 = vst [vmem:[#allocation5 + $0x30] sm:$0xff] %v656_v9  ;;  %689 = vst [vmem:[#allocation5 + $0x38] sm:$0xff] %v657_v27 }
 0x305   :  { %694 = vst [vmem:[#allocation5 + $0x60] sm:$0xff] %v662_v28  ;;  %695 = vst [vmem:[#allocation5 + $0x68] sm:$0xff] %v663_v14  ;;  %v606_v15 = vpop.permute.xlu1 %605  ;;  %v621_v30 = vpop.permute.xlu0 %620 }
 0x306   :  { %v660_v31 = vmul.f32 %v606_v15, %v940_v38  ;;  %v661_v41 = vmul.f32 %v606_v15, %v942_v39  ;;  %v666_v26 = vmul.f32 %v621_v30, %v864_v0  ;;  %v667_v20 = vmul.f32 %v621_v30, %v866_v1  ;;  %v1219_v39 = vld [vmem:[#allocation8_spill] sm:$0xff] }
 0x308   :  { %692 = vst [vmem:[#allocation5 + $0x50] sm:$0xff] %v660_v31  ;;  %693 = vst [vmem:[#allocation5 + $0x58] sm:$0xff] %v661_v41 }
 0x309   :  { %698 = vst [vmem:[#allocation5 + $0x80] sm:$0xff] %v666_v26  ;;  %699 = vst [vmem:[#allocation5 + $0x88] sm:$0xff] %v667_v20  ;;  %v614_v21 = vpop.permute.xlu1 %613  ;;  %v629_v46 = vpop.permute.xlu0 %628 }
 0x30a   :  { %v664_v47 = vmul.f32 %v614_v21, %v972_v54  ;;  %v665_v3 = vmul.f32 %v614_v21, %v974_v55  ;;  %v670_v34 = vmul.f32 %v629_v46, %v888_v12  ;;  %v671_v38 = vmul.f32 %v629_v46, %v1218_v42 }
 0x30c   :  { %696 = vst [vmem:[#allocation5 + $0x70] sm:$0xff] %v664_v47  ;;  %697 = vst [vmem:[#allocation5 + $0x78] sm:$0xff] %v665_v3 }
 0x30d   :  { %702 = vst [vmem:[#allocation5 + $0xa0] sm:$0xff] %v670_v34  ;;  %703 = vst [vmem:[#allocation5 + $0xa8] sm:$0xff] %v671_v38  ;;  %v625_v0 = vpop.permute.xlu1 %624  ;;  %v637_v1 = vpop.permute.xlu0 %636 }
 0x30e   :  { %v668_v25 = vmul.f32 %v625_v0, %v1219_v39  ;;  %v669_v40 = vmul.f32 %v625_v0, %v1220_v22  ;;  %v674_v48 = vmul.f32 %v637_v1, %v1221_v43  ;;  %v675_v54 = vmul.f32 %v637_v1, %v1222_v11 }
 0x310   :  { %700 = vst [vmem:[#allocation5 + $0x90] sm:$0xff] %v668_v25  ;;  %701 = vst [vmem:[#allocation5 + $0x98] sm:$0xff] %v669_v40 }
 0x311   :  { %706 = vst [vmem:[#allocation5 + $0xc0] sm:$0xff] %v674_v48  ;;  %707 = vst [vmem:[#allocation5 + $0xc8] sm:$0xff] %v675_v54  ;;  %v633_v12 = vpop.permute.xlu1 %632  ;;  %v645_v55 = vpop.permute.xlu0 %644 }
 0x312   :  { %v672_v10 = vmul.f32 %v633_v12, %v1223_v17  ;;  %v673_v58 = vmul.f32 %v633_v12, %v1224_v35  ;;  %v678_v59 = vmul.f32 %v645_v55, %v1225_v6  ;;  %v679_v16 = vmul.f32 %v645_v55, %v1226_v53 }
 0x314   :  { %704 = vst [vmem:[#allocation5 + $0xb0] sm:$0xff] %v672_v10  ;;  %705 = vst [vmem:[#allocation5 + $0xb8] sm:$0xff] %v673_v58 }
 0x315   :  { %710 = vst [vmem:[#allocation5 + $0xe0] sm:$0xff] %v678_v59  ;;  %711 = vst [vmem:[#allocation5 + $0xe8] sm:$0xff] %v679_v16  ;;  %v641_v24 = vpop.permute.xlu1 %640 }
 0x316   :  { %v676_v51 = vmul.f32 %v641_v24, %v1227_v60  ;;  %v677_v5 = vmul.f32 %v641_v24, %v1228_v57 }
 0x318   :  { %708 = vst [vmem:[#allocation5 + $0xd0] sm:$0xff] %v676_v51  ;;  %709 = vst [vmem:[#allocation5 + $0xd8] sm:$0xff] %v677_v5 }
 0x319   :  { %v649_v52 = vpop.permute.xlu1 %648 }
 0x31a   :  { %v680_v23 = vmul.f32 %v649_v52, %v1229_v56  ;;  %v681_v37 = vmul.f32 %v649_v52, %v1230_v49 }
 0x31c   :  { %712 = vst [vmem:[#allocation5 + $0xf0] sm:$0xff] %v680_v23  ;;  %713 = vst [vmem:[#allocation5 + $0xf8] sm:$0xff] %v681_v37 }
 0x31d   :  { %819 = shalt.err (!%p816_p9)
}
 0x31e   :  { %725 = dma.vmem_to_hbm [thread:$0]  %s720_s8, 4096, %s1191_s3, [#allocation4], %s833_s15, %s833_s15, %s834_s16  }
 0x31f   :  { %830 = dma.done.wait [#allocation4], 4096  }
 0x320   :  { %831 = vsyncadd [#allocation4], 4294963200 }
 0x321   :  { %729 = vsyncpa [#allocation3], 1 }
 0x322   :  { %730 = vsyncpa [#allocation4], 1 }

</bundles_post_ra>
